<compile_context>
chip_gen: v7x
topology: tpu7x:2x2x1
jax: 0.10.0
libtpu: 0.0.40
codegen_flags: <defaults>
</compile_context>

<pallas_src>
import jax
import jax.numpy as jnp
from jax.experimental import pallas as pl
from jax.experimental.pallas import tpu as pltpu


def _make_kernel(Cout, Cr):
    def kernel(xcol_ref, w_ref, p_ref, o_ref):
        # xcol_ref: (9*Cin, HW)      im2col'd + transposed input (this image)
        # w_ref:    (Cout, 9*Cin)    conv weights with BN scale folded in
        # p_ref:    (Cout, 2 + 3*Cr) packed per-channel params (see wrapper)
        # o_ref:    (Cout, HW)       NCHW-flattened fused output
        p = p_ref[...]

        # --- 3x3 conv (padding=1) as a single K=9*Cin MXU matmul ------------
        z = jnp.dot(w_ref[...], xcol_ref[...],
                    preferred_element_type=jnp.float32)        # (Cout, HW)

        # --- BatchNorm (folded) + ReLU --------------------------------------
        bn_shift = p[:, 0:1]                                   # (Cout, 1)
        z = jnp.maximum(z + bn_shift, 0.0)

        # --- SE: squeeze -> fc1 -> ReLU -> fc2 -> sigmoid -> scale ----------
        y = jnp.mean(z, axis=1, keepdims=True)                 # (Cout, 1) lane reduce
        w1t = p[:, 1:1 + Cr]                                    # (Cout, Cr) = fc1.weight.T
        w2 = p[:, 1 + Cr:1 + 2 * Cr]                            # (Cout, Cr) = fc2.weight
        b2 = p[:, 1 + 2 * Cr:2 + 2 * Cr]                        # (Cout, 1)  = fc2.bias
        b1 = p[0:1, 2 + 2 * Cr:2 + 3 * Cr]                      # (1, Cr)    = fc1.bias

        h = jnp.sum(w1t * y, axis=0, keepdims=True) + b1        # (1, Cr) sublane reduce
        h = jnp.maximum(h, 0.0)
        s = jnp.sum(w2 * h, axis=1, keepdims=True) + b2         # (Cout, 1) lane reduce
        s = jax.nn.sigmoid(s)

        o_ref[...] = (z * s).astype(o_ref.dtype)

    return kernel


@jax.jit
def conv_block_with_attention(x, conv_w, conv_b, gamma, beta, rmean, rvar,
                              fc1_w, fc1_b, fc2_w, fc2_b):
    """Forward of ConvBlockWithAttention (BatchNorm in eval mode)."""
    eps = 1e-5
    B, Cin, H, W = x.shape
    Cout = conv_w.shape[0]
    Cr = fc1_w.shape[0]
    HW = H * W
    K9 = 9 * Cin

    # Fold eval-mode BatchNorm into the conv weights / a per-channel shift.
    g = gamma / jnp.sqrt(rvar + eps)                           # (Cout,)
    bn_shift = (conv_b - rmean) * g + beta                     # (Cout,)
    # (Cout,Cin,3,3) -> (Cout,3,3,Cin) -> (Cout, 9*Cin); column = tap*Cin + c.
    w9 = (jnp.transpose(conv_w * g[:, None, None, None], (0, 2, 3, 1))
          .reshape(Cout, K9)).astype(jnp.float32)

    # im2col, transposed so HW is the (lane-dense) last dim: (B, 9*Cin, HW).
    # Row ordering tap*Cin + c matches the weight packing above.
    xp = jnp.pad(x, ((0, 0), (0, 0), (1, 1), (1, 1)))
    cols = [xp[:, :, kh:kh + H, kw:kw + W].reshape(B, Cin, HW)
            for kh in range(3) for kw in range(3)]
    xcol = jnp.concatenate(cols, axis=1).astype(jnp.float32)    # (B, K9, HW)

    # Pack all small per-channel params into one lane-dense (Cout, 2+3*Cr)
    # array: a single DMA / double-buffer instead of five tiny padded ones.
    params = jnp.concatenate([
        bn_shift[:, None],                                # col 0
        fc1_w.T,                                          # cols 1        .. 1+Cr
        fc2_w,                                            # cols 1+Cr     .. 1+2Cr
        fc2_b[:, None],                                   # col  1+2Cr
        jnp.broadcast_to(fc1_b[None, :], (Cout, Cr)),     # cols 2+2Cr    .. 2+3Cr (row 0 used)
    ], axis=1).astype(jnp.float32)

    kernel = _make_kernel(Cout, Cr)

    cost = pl.CostEstimate(
        flops=2 * B * HW * K9 * Cout + 4 * B * HW * Cout,
        transcendentals=B * Cout,
        bytes_accessed=4 * (B * K9 * HW + Cout * K9
                            + Cout * (2 + 3 * Cr) + B * Cout * HW),
    )

    out = pl.pallas_call(
        kernel,
        out_shape=jax.ShapeDtypeStruct((B, Cout, HW), x.dtype),
        grid_spec=pltpu.PrefetchScalarGridSpec(
            num_scalar_prefetch=0,
            grid=(B,),
            in_specs=[
                pl.BlockSpec((None, K9, HW), lambda b: (b, 0, 0)),
                pl.BlockSpec((Cout, K9), lambda b: (0, 0)),
                pl.BlockSpec((Cout, 2 + 3 * Cr), lambda b: (0, 0)),
            ],
            out_specs=pl.BlockSpec((None, Cout, HW), lambda b: (b, 0, 0)),
        ),
        compiler_params=pltpu.CompilerParams(
            dimension_semantics=("parallel",)),
        cost_estimate=cost,
    )(xcol, w9, params)

    # (B, Cout, HW) -> (B, Cout, H, W): pure reshape, no transpose / no copy.
    return out.reshape(B, Cout, H, W)


def conv_block_with_attention_ref(x, conv_w, conv_b, gamma, beta, rmean, rvar,
                                  fc1_w, fc1_b, fc2_w, fc2_b):
    # Pure-JAX reference mirroring the PyTorch forward (BN in eval mode).
    eps = 1e-5
    hp = jax.lax.Precision.HIGHEST
    y = jax.lax.conv_general_dilated(
        x, conv_w, window_strides=(1, 1), padding=((1, 1), (1, 1)),
        dimension_numbers=("NCHW", "OIHW", "NCHW"), precision=hp)
    y = y + conv_b.reshape(1, -1, 1, 1)
    y = ((y - rmean.reshape(1, -1, 1, 1))
         / jnp.sqrt(rvar.reshape(1, -1, 1, 1) + eps)
         * gamma.reshape(1, -1, 1, 1) + beta.reshape(1, -1, 1, 1))
    y = jnp.maximum(y, 0.0)
    B, C = y.shape[:2]
    s = y.reshape(B, C, -1).mean(axis=2)
    s = jnp.maximum(jnp.dot(s, fc1_w.T, precision=hp) + fc1_b, 0.0)
    s = jax.nn.sigmoid(jnp.dot(s, fc2_w.T, precision=hp) + fc2_b)
    return y * s.reshape(B, C, 1, 1)


if __name__ == "__main__":
    # ConvBlockWithAttention(in_channels=4, out_channels=32); SE reduction=16.
    B, Cin, Cout, H, W = 2, 4, 32, 16, 16
    reduction = 16
    Cr = Cout // reduction

    key = jax.random.PRNGKey(0)
    ks = jax.random.split(key, 12)

    x = jax.random.normal(ks[0], (B, Cin, H, W), dtype=jnp.float32)
    conv_w = jax.random.normal(ks[1], (Cout, Cin, 3, 3), dtype=jnp.float32) * 0.1
    conv_b = jax.random.normal(ks[2], (Cout,), dtype=jnp.float32) * 0.1
    gamma = jax.random.uniform(ks[3], (Cout,), dtype=jnp.float32,
                               minval=0.5, maxval=1.5)
    beta = jax.random.normal(ks[4], (Cout,), dtype=jnp.float32) * 0.1
    rmean = jax.random.normal(ks[5], (Cout,), dtype=jnp.float32) * 0.1
    rvar = jax.random.uniform(ks[6], (Cout,), dtype=jnp.float32,
                              minval=0.5, maxval=1.5)
    fc1_w = jax.random.normal(ks[7], (Cr, Cout), dtype=jnp.float32) * 0.1
    fc1_b = jax.random.normal(ks[8], (Cr,), dtype=jnp.float32) * 0.1
    fc2_w = jax.random.normal(ks[9], (Cout, Cr), dtype=jnp.float32) * 0.1
    fc2_b = jax.random.normal(ks[10], (Cout,), dtype=jnp.float32) * 0.1

    out = conv_block_with_attention(x, conv_w, conv_b, gamma, beta, rmean,
                                    rvar, fc1_w, fc1_b, fc2_w, fc2_b)
    out = jax.block_until_ready(out)

    ref = conv_block_with_attention_ref(x, conv_w, conv_b, gamma, beta, rmean,
                                        rvar, fc1_w, fc1_b, fc2_w, fc2_b)
    assert out.shape == (B, Cout, H, W)
    assert jnp.allclose(out, ref, atol=2e-3, rtol=2e-3), "mismatch vs reference"

    print("KERNEL_OK")
</pallas_src>

<mosaic_0001>
module attributes {stable_mosaic.version = 11 : i64} {
  func.func @kernel(%arg0: i32, %arg1: memref<1x36x256xf32, #tpu.memory_space<vmem>>, %arg2: memref<32x36xf32, #tpu.memory_space<vmem>>, %arg3: memref<32x8xf32, #tpu.memory_space<vmem>>, %arg4: memref<1x32x256xf32, #tpu.memory_space<vmem>>) attributes {dimension_semantics = [#tpu.dimension_semantics<parallel>], iteration_bounds = array<i64: 2>, scalar_prefetch = 0 : i64, scratch_operands = 0 : i64, tpu.core_type = #tpu.core_type<tc>, window_params = [{transform_indices = @transform_0, window_bounds = array<i64: 1, 36, 256>}, {pipeline_mode = #tpu.pipeline_mode<synchronous>, transform_indices = @transform_1, window_bounds = array<i64: 32, 36>}, {pipeline_mode = #tpu.pipeline_mode<synchronous>, transform_indices = @transform_2, window_bounds = array<i64: 32, 8>}, {transform_indices = @transform_3, window_bounds = array<i64: 1, 32, 256>}]} {
    %c0 = arith.constant 0 : index
    %c0_0 = arith.constant 0 : index
    %0 = vector.load %arg3[%c0, %c0_0] : memref<32x8xf32, #tpu.memory_space<vmem>>, vector<32x8xf32>
    %c0_1 = arith.constant 0 : index
    %c0_2 = arith.constant 0 : index
    %1 = vector.load %arg2[%c0_1, %c0_2] : memref<32x36xf32, #tpu.memory_space<vmem>>, vector<32x36xf32>
    %c0_3 = arith.constant 0 : index
    %c0_4 = arith.constant 0 : index
    %c0_5 = arith.constant 0 : index
    %2 = vector.load %arg1[%c0_3, %c0_4, %c0_5] : memref<1x36x256xf32, #tpu.memory_space<vmem>>, vector<1x36x256xf32>
    %3 = vector.shape_cast %2 : vector<1x36x256xf32> to vector<36x256xf32>
    %cst = arith.constant dense<0.000000e+00> : vector<32x256xf32>
    %4 = tpu.matmul %1, %3, %cst {dimension_numbers = #tpu.dot_dimension_numbers<[1], [0], [0], [1], [0, 0, 1, 1], [], []>} : vector<32x36xf32>, vector<36x256xf32>, vector<32x256xf32> -> vector<32x256xf32>
    %5 = vector.extract_strided_slice %0 {offsets = [0, 0], sizes = [32, 1], strides = [1, 1]} : vector<32x8xf32> to vector<32x1xf32>
    %6 = vector.broadcast %5 : vector<32x1xf32> to vector<32x256xf32>
    %7 = arith.addf %4, %6 : vector<32x256xf32>
    %cst_6 = arith.constant 0.000000e+00 : f32
    %8 = vector.broadcast %cst_6 : f32 to vector<32x256xf32>
    %9 = arith.maximumf %7, %8 : vector<32x256xf32>
    %cst_7 = arith.constant dense<0.000000e+00> : vector<32xf32>
    %10 = vector.multi_reduction <add>, %9, %cst_7 [1] : vector<32x256xf32> to vector<32xf32>
    %11 = vector.shape_cast %10 : vector<32xf32> to vector<32x1xf32>
    %cst_8 = arith.constant 2.560000e+02 : f32
    %12 = vector.broadcast %cst_8 : f32 to vector<32x1xf32>
    %13 = arith.divf %11, %12 : vector<32x1xf32>
    %14 = vector.extract_strided_slice %0 {offsets = [0, 1], sizes = [32, 2], strides = [1, 1]} : vector<32x8xf32> to vector<32x2xf32>
    %15 = vector.extract_strided_slice %0 {offsets = [0, 3], sizes = [32, 2], strides = [1, 1]} : vector<32x8xf32> to vector<32x2xf32>
    %16 = vector.extract_strided_slice %0 {offsets = [0, 5], sizes = [32, 1], strides = [1, 1]} : vector<32x8xf32> to vector<32x1xf32>
    %17 = vector.extract_strided_slice %0 {offsets = [0, 6], sizes = [1, 2], strides = [1, 1]} : vector<32x8xf32> to vector<1x2xf32>
    %18 = vector.broadcast %13 : vector<32x1xf32> to vector<32x2xf32>
    %19 = arith.mulf %14, %18 : vector<32x2xf32>
    %cst_9 = arith.constant dense<0.000000e+00> : vector<2xf32>
    %20 = vector.multi_reduction <add>, %19, %cst_9 [0] : vector<32x2xf32> to vector<2xf32>
    %21 = vector.shape_cast %20 : vector<2xf32> to vector<1x2xf32>
    %22 = arith.addf %21, %17 : vector<1x2xf32>
    %cst_10 = arith.constant 0.000000e+00 : f32
    %23 = vector.broadcast %cst_10 : f32 to vector<1x2xf32>
    %24 = arith.maximumf %22, %23 : vector<1x2xf32>
    %25 = vector.broadcast %24 : vector<1x2xf32> to vector<32x2xf32>
    %26 = arith.mulf %15, %25 : vector<32x2xf32>
    %cst_11 = arith.constant dense<0.000000e+00> : vector<32xf32>
    %27 = vector.multi_reduction <add>, %26, %cst_11 [1] : vector<32x2xf32> to vector<32xf32>
    %28 = vector.shape_cast %27 : vector<32xf32> to vector<32x1xf32>
    %29 = arith.addf %28, %16 : vector<32x1xf32>
    %30 = arith.negf %29 : vector<32x1xf32>
    %31 = math.exp %30 : vector<32x1xf32>
    %cst_12 = arith.constant 1.000000e+00 : f32
    %32 = vector.broadcast %cst_12 : f32 to vector<32x1xf32>
    %33 = arith.addf %32, %31 : vector<32x1xf32>
    %34 = arith.divf %32, %33 : vector<32x1xf32>
    %35 = vector.broadcast %34 : vector<32x1xf32> to vector<32x256xf32>
    %36 = arith.mulf %9, %35 : vector<32x256xf32>
    %c0_13 = arith.constant 0 : index
    %c0_14 = arith.constant 0 : index
    %c0_15 = arith.constant 0 : index
    %37 = vector.load %arg4[%c0_13, %c0_14, %c0_15] : memref<1x32x256xf32, #tpu.memory_space<vmem>>, vector<1x32x256xf32>
    %38 = vector.shape_cast %37 : vector<1x32x256xf32> to vector<32x256xf32>
    %39 = vector.shape_cast %36 : vector<32x256xf32> to vector<1x32x256xf32>
    tpu.vector_store %arg4[%c0_13, %c0_14, %c0_15], %39 {strides = array<i32>} : memref<1x32x256xf32, #tpu.memory_space<vmem>>, vector<1x32x256xf32>,
    return
  }
  func.func @transform_0(%arg0: i32) -> (i32, i32, i32) {
    %c0_i32 = arith.constant 0 : i32
    %c0_i32_0 = arith.constant 0 : i32
    %c0_i32_1 = arith.constant 0 : i32
    return %arg0, %c0_i32, %c0_i32_0 : i32, i32, i32
  }
  func.func @transform_1(%arg0: i32) -> (i32, i32) {
    %c0_i32 = arith.constant 0 : i32
    %c0_i32_0 = arith.constant 0 : i32
    %c0_i32_1 = arith.constant 0 : i32
    return %c0_i32, %c0_i32_0 : i32, i32
  }
  func.func @transform_2(%arg0: i32) -> (i32, i32) {
    %c0_i32 = arith.constant 0 : i32
    %c0_i32_0 = arith.constant 0 : i32
    %c0_i32_1 = arith.constant 0 : i32
    return %c0_i32, %c0_i32_0 : i32, i32
  }
  func.func @transform_3(%arg0: i32) -> (i32, i32, i32) {
    %c0_i32 = arith.constant 0 : i32
    %c0_i32_0 = arith.constant 0 : i32
    %c0_i32_1 = arith.constant 0 : i32
    return %arg0, %c0_i32, %c0_i32_0 : i32, i32, i32
  }
}

</mosaic_0001>

<bundles_post_ra>
// kernel: conv_block_with_attention.1
= control target key start
LH: loop header
LB: loop body
LE: loop exit
PB: predicated region body
PF: predicated region fallthrough
CT: control target
= control target key end

     0   :  { %s630_s12 = smov 0   ;;  %s756_s0 = inlined_call_operand.vmem [shape: f32[2,36,256], index: 0, kind: input, shape index: {}]   ;;  %s757_s1 = inlined_call_operand.vmem [shape: f32[32,36], index: 1, kind: input, shape index: {}]   ;;  %s758_s2 = inlined_call_operand.vmem [shape: f32[32,8], index: 2, kind: input, shape index: {}]   ;;  %s759_s3 = inlined_call_operand.vmem [shape: f32[2,32,256], index: 3, kind: output, shape index: {}]  }
   0x1 LB: > { %s526_s13 = sadd.s32 4294967295, %s602_s12   ;;  %p530_p0 = scmp.ge.s32.totalorder %s602_s12, 1  ;;  %s602_s12 = sphi %s630_s12, %s13_s12  }
   0x2   : > { %p137_p1 = scmp.lt.s32.totalorder %s602_s12, 3 }
   0x4   : > { %p138_p2 = pnand %p530_p0, %p137_p1 }
   0x5   : > { %p161_p3 = scmp.lt.s32.totalorder (!%p138_p2), %s526_s13, 1  ;;  %v604_v0 = vmov (!%p138_p2), 0.0   ;;  %v641_v1 = vld [vmem:[%s758_s2] sm:$0xff] (!%p138_p2)  ;;  %v605_v2 = vmov (!%p138_p2), 0   ;;  %v648_v3 = vld [vmem:[%s758_s2 + $0x10] sm:$0xff] (!%p138_p2)  ;;  %v656_v4 = vld [vmem:[%s758_s2 + $0x8] sm:$0xff] (!%p138_p2) }
   0x6   : > { %141 = sbr.rel (%p138_p2) target bundleno = 966 (0x3c6), region = 32  ;;  %293 = vmatprep.mubr.f32.mxu0 (!%p138_p2), %v604_v0  ;;  %305 = vmatprep.mubr.f32.mxu1 (!%p138_p2), %v604_v0  ;;  %v661_v5 = vld [vmem:[%s758_s2 + $0x18] sm:$0xff] (!%p138_p2)  ;;  %vm222_vm0 = vcmask (!%p138_p2), 1043456   ;;  %v175_v20 = vld [vmem:[%s757_s1] sm:$0xff] (!%p138_p2)  ;;  %vm209_vm1 = vcmask (!%p138_p2), 293888   ;;  %v177_v21 = vld [vmem:[%s757_s1 + $0x10] sm:$0xff] (!%p138_p2) }
   0x7   : > { %576 = vset.pattern.permute.xlu0 (!%p138_p2), %v605_v2  ;;  %577 = vset.pattern.permute.xlu1 (!%p138_p2), %v605_v2  ;;  %v176_v22 = vld [vmem:[%s757_s1 + $0x8] sm:$0xff] (!%p138_p2)  ;;  %v178_v23 = vld [vmem:[%s757_s1 + $0x18] sm:$0xff] (!%p138_p2)  ;;  %s606_s7 = smov (!%p138_p2), 123   ;;  %vm347_vm2 = vcmask (!%p138_p2), 23560   ;;  %s607_s8 = smov (!%p138_p2), 2   ;;  %vm394_vm3 = vcmask (!%p138_p2), 15360  }
   0x8   : > { %191 = vperm.xlu0 (!%p138_p2), %576, %v641_v1   ;;  %201 = vperm.xlu1 (!%p138_p2), %577, %v648_v3   ;;  %s608_s9 = smov (!%p138_p2), 125  }
   0xc   : > { %196 = vperm.xlu0 (!%p138_p2), %576, %v656_v4   ;;  %206 = vperm.xlu1 (!%p138_p2), %577, %v661_v5  }
   0xd   : > { %s761_s13 = smov (!%p161_p3, %s526_s13), 1 }
   0xe   : > { %s561_s18 = smul.u32 80, %s761_s13  ;;  %s546_s10 = sshll.u32 %s761_s13, 6 }
   0xf   : > { %s170_s15 = scalar_lea.vmem %s759_s3, %s546_s10 }
  0x10   : > { %s165_s25 = scalar_lea.vmem %s756_s0, %s561_s18 }
  0x11   : > { %v180_v6 = vld [vmem:[%s165_s25 + $0x8] sm:$0xff]  ;;  %v182_v7 = vld [vmem:[%s165_s25 + $0x18] sm:$0xff]  ;;  %v179_v8 = vld [vmem:[%s165_s25] sm:$0xff] }
  0x12   : > { %v547_v9 = vpack.c.bf16 %v182_v7, %v180_v6  ;;  %v181_v10 = vld [vmem:[%s165_s25 + $0x10] sm:$0xff]  ;;  %v184_v11 = vld [vmem:[%s165_s25 + $0x28] sm:$0xff]  ;;  %v186_v12 = vld [vmem:[%s165_s25 + $0x38] sm:$0xff] }
  0x13   : > { %v549_v13 = vpack.c.bf16 %v181_v10, %v179_v8  ;;  %v551_v14 = vpack.c.bf16 %v186_v12, %v184_v11  ;;  %v183_v15 = vld [vmem:[%s165_s25 + $0x20] sm:$0xff]  ;;  %v185_v16 = vld [vmem:[%s165_s25 + $0x30] sm:$0xff]  ;;  %v188_v18 = vld [vmem:[%s165_s25 + $0x48] sm:$0xf] }
  0x14   : > { %548 = vmatprep.subr.bf16.mxu0 %v547_v9  ;;  %555 = vmatprep.subr.bf16.mxu1 %v547_v9  ;;  %v553_v17 = vpack.c.bf16 %v185_v16, %v183_v15  ;;  %v187_v19 = vld [vmem:[%s165_s25 + $0x40] sm:$0xf] }
  0x15   : > { %550 = vmatpush1.bf16.msra.mxu0 %v549_v13  ;;  %558 = vmatpush1.bf16.msra.mxu1 %v549_v13 }
  0x16   : > { %552 = vmatprep.subr.bf16.mxu0 %v551_v14  ;;  %556 = vmatprep.subr.bf16.mxu1 %v551_v14 }
  0x19   : > { %554 = vmatpush1.bf16.msra.mxu0 %v553_v17  ;;  %559 = vmatpush1.bf16.msra.mxu1 %v553_v17  ;;  %v366_v17 = vlaneseq }
  0x1a   : > { %534 = vmatprep.subr.msk.mxu0 %vm222_vm0, %v188_v18  ;;  %557 = vmatprep.subr.msk.mxu1 %vm222_vm0, %v188_v18 }
  0x1d   : > { %535 = vmatpush1.msk.msra.mxu0 %vm222_vm0, %v187_v19  ;;  %560 = vmatpush1.msk.msra.mxu1 %vm222_vm0, %v187_v19 }
  0x1e   : > { %536 = vmatmul.mubr.msk.f32.vlgmr.msra.gmra.mrb[0].mxu0 %vm209_vm1, %v175_v20  ;;  %538 = vmatmul.mubr.msk.f32.vlgmr.msra.gmra.mrb[0].mxu1 %vm209_vm1, %v177_v21  ;;  %v367_v20 = vshrl.u32 %v366_v17, 7 }
  0x1f   : > { %299 = vmatprep.mubr.f32.mxu0 %v604_v0  ;;  %311 = vmatprep.mubr.f32.mxu1 %v604_v0 }
  0x22   : > { %537 = vmatmul.mubr.msk.f32.gmra.mrb[2].mxu0 %vm209_vm1, %v176_v22  ;;  %539 = vmatmul.mubr.msk.f32.gmra.mrb[2].mxu1 %vm209_vm1, %v178_v23 }
  0x87   : > { %v192_v24 = vpop.permute.xlu0 %191  ;;  %v202_v25 = vpop.permute.xlu1 %201 }
  0x8b   : > { %v197_v35 = vpop.permute.xlu0 %196  ;;  %v207_v36 = vpop.permute.xlu1 %206 }
  0xf1   : > { %v295_v26 = vpop.f32.mrb[0].mxu0  ;;  %v307_v27 = vpop.f32.mrb[0].mxu1 }
  0xf2   : > { %v680_v28 = vadd.f32 %v295_v26, %v192_v24  ;;  %v297_v29 = vpop.f32.mrb[1].mxu0  ;;  %v682_v30 = vadd.f32 %v307_v27, %v202_v25  ;;  %v309_v31 = vpop.f32.mrb[1].mxu1 }
  0xf3   : > { %v684_v32 = vadd.f32 %v297_v29, %v192_v24  ;;  %v686_v33 = vadd.f32 %v309_v31, %v202_v25  ;;  %v368_v24 = vsub.s32 0, %v367_v20 }
  0xf4   : > { %v318_v34 = vmax.f32 %v680_v28, 0.0  ;;  %v322_v38 = vmax.f32 %v682_v30, 0.0 }
  0xf5   : > { %v319_v37 = vmax.f32 %v684_v32, 0.0  ;;  %v323_v39 = vmax.f32 %v686_v33, 0.0  ;;  %v301_v40 = vpop.f32.mrb[2].mxu0  ;;  %v313_v41 = vpop.f32.mrb[2].mxu1 }
  0xf6   : > { %v692_v42 = vadd.f32 %v301_v40, %v197_v35  ;;  %v303_v43 = vpop.f32.mrb[3].mxu0  ;;  %v315_v44 = vpop.f32.mrb[3].mxu1  ;;  %v694_v45 = vadd.f32 %v313_v41, %v207_v36 }
  0xf7   : > { %v696_v46 = vadd.f32 %v303_v43, %v197_v35  ;;  %v698_v47 = vadd.f32 %v315_v44, %v207_v36  ;;  %v326_v48 = vadd.f32 %v319_v37, %v318_v34  ;;  %v332_v51 = vadd.f32 %v323_v39, %v322_v38 }
  0xf8   : > { %v320_v49 = vmax.f32 %v692_v42, 0.0  ;;  %v324_v52 = vmax.f32 %v694_v45, 0.0 }
  0xf9   : > { %v321_v50 = vmax.f32 %v696_v46, 0.0  ;;  %327 = vadd.xlane.f32.xlu0 %v326_v48  ;;  %v325_v53 = vmax.f32 %v698_v47, 0.0 }
  0xfb   : > { %v329_v54 = vadd.f32 %v321_v50, %v320_v49  ;;  %v335_v55 = vadd.f32 %v325_v53, %v324_v52 }
  0xfd   : > { %330 = vadd.xlane.f32.xlu1 %v329_v54  ;;  %333 = vadd.xlane.f32.xlu0 %v332_v51 }
 0x101   : > { %336 = vadd.xlane.f32.xlu0 %v335_v55 }
 0x10e   : > { %361 = vrot.lane.b32.xlu1 %v641_v1, %s606_s7 }
 0x186   : > { %v328_v56 = vpop.xlane.xlu0 %327 }
 0x187   : > { %v339_v57 = vmul.f32 0.00390625, %v328_v56 }
 0x189   : > { %v343_v60 = vmul.f32 %v339_v57, %v641_v1  ;;  %v609_v57 = vmov 5  }
 0x18a   : > { %v331_v58 = vpop.xlane.xlu1 %330  ;;  %v334_v59 = vpop.xlane.xlu0 %333  ;;  %578 = vset.pattern.permute.xlu1 %v609_v57  ;;  %579 = vset.pattern.permute.xlu0 %v609_v57 }
 0x18b   : > { %v340_v61 = vmul.f32 0.00390625, %v331_v58  ;;  %v341_v62 = vmul.f32 0.00390625, %v334_v59  ;;  %v348_v6 = vsel %vm347_vm2, %v343_v60, 0.0 }
 0x18d   : > { %v344_v63 = vmul.f32 %v340_v61, %v656_v4  ;;  %v345_v0 = vmul.f32 %v341_v62, %v648_v3 }
 0x18e   : > { %v337_v2 = vpop.xlane.xlu0 %336  ;;  %v362_v22 = vpop.permute.xlu1 %361 }
 0x18f   : > { %v349_v7 = vsel %vm347_vm2, %v344_v63, 0.0  ;;  %v342_v8 = vmul.f32 0.00390625, %v337_v2  ;;  %v351_v10 = vsel %vm347_vm2, %v345_v0, 0.0 }
 0x190   : > { %v350_v9 = vadd.f32 %v349_v7, %v348_v6 }
 0x191   : > { %v346_v11 = vmul.f32 %v342_v8, %v661_v5 }
 0x192   : > { %v352_v12 = vadd.f32 %v351_v10, %v350_v9 }
 0x193   : > { %v353_v13 = vsel %vm347_vm2, %v346_v11, 0.0 }
 0x194   : > { %v354_v14 = vadd.f32 %v353_v13, %v352_v12 }
 0x196   : > { %v355_v15 = vrot.slane %v354_v14, 4 }
 0x198   : > { %v356_v16 = vadd.f32 %v355_v15, %v354_v14 }
 0x19a   : > { %v357_v18 = vrot.slane %v356_v16, 2 }
 0x19c   : > { %v358_v19 = vadd.f32 %v357_v18, %v356_v16 }
 0x19e   : > { %v359_v21 = vrot.slane %v358_v19, 1 }
 0x1a0   : > { %v360_v23 = vadd.f32 %v359_v21, %v358_v19 }
 0x1a2   : > { %v364_v25 = vadd.f32 %v362_v22, %v360_v23 }
 0x1a4   : > { %v365_v26 = vmax.f32 %v364_v25, 0.0 }
 0x1a6   : > { %v369_v27 = vrot.slane %v365_v26, %v368_v24 }
 0x1a8   : > { %371 = vrot.lane.b32.xlu0 %v369_v27, %s607_s8 }
 0x21a   : > { %v372_v29 = vpop.permute.xlu0 %371 }
 0x21b   : > { %v376_v31 = vmul.f32 %v372_v29, %v648_v3  ;;  %v374_v35 = vmul.f32 %v372_v29, %v641_v1  ;;  %v375_v36 = vmul.f32 %v372_v29, %v656_v4  ;;  %v377_v40 = vmul.f32 %v372_v29, %v661_v5 }
 0x21d   : > { %386 = vrot.lane.b32.xlu0 %v376_v31, %s608_s9  ;;  %382 = vrot.lane.b32.xlu1 %v374_v35, %s608_s9 }
 0x221   : > { %384 = vrot.lane.b32.xlu1 %v375_v36, %s608_s9 }
 0x225   : > { %388 = vrot.lane.b32.xlu1 %v377_v40, %s608_s9 }
 0x28f   : > { %v383_v41 = vpop.permute.xlu1 %382  ;;  %v387_v44 = vpop.permute.xlu0 %386 }
 0x290   : > { %v395_v43 = vsel %vm394_vm3, %v383_v41, 0.0  ;;  %v401_v51 = vsel %vm394_vm3, %v387_v44, 0.0 }
 0x291   : > { %396 = vadd.xlane.f32.xlu0 %v395_v43 }
 0x293   : > { %v385_v48 = vpop.permute.xlu1 %384 }
 0x294   : > { %v398_v54 = vsel %vm394_vm3, %v385_v48, 0.0 }
 0x295   : > { %402 = vadd.xlane.f32.xlu0 %v401_v51  ;;  %399 = vadd.xlane.f32.xlu1 %v398_v54 }
 0x297   : > { %v389_v55 = vpop.permute.xlu1 %388 }
 0x298   : > { %v404_v56 = vsel %vm394_vm3, %v389_v55, 0.0 }
 0x299   : > { %405 = vadd.xlane.f32.xlu0 %v404_v56 }
 0x31e   : > { %v397_v58 = vpop.xlane.xlu0 %396 }
 0x31f   : > { %v407_v59 = vadd.f32 %v397_v58, %v641_v1 }
 0x321   : > { %v540_v60 = vmul.f32 -1.442695, %v407_v59 }
 0x322   : > { %v403_v61 = vpop.xlane.xlu0 %402  ;;  %v400_v62 = vpop.xlane.xlu1 %399 }
 0x323   : > { %580 = vpow2.f32 %v540_v60  ;;  %v409_v63 = vadd.f32 %v403_v61, %v648_v3  ;;  %v408_v0 = vadd.f32 %v400_v62, %v656_v4 }
 0x325   : > { %v542_v2 = vmul.f32 -1.442695, %v409_v63  ;;  %v541_v6 = vmul.f32 -1.442695, %v408_v0 }
 0x326   : > { %v406_v7 = vpop.xlane.xlu0 %405 }
 0x327   : > { %582 = vpow2.f32 %v542_v2  ;;  %v410_v8 = vadd.f32 %v406_v7, %v661_v5 }
 0x328   : > { %584 = vpow2.f32 %v541_v6 }
 0x329   : > { %v543_v9 = vmul.f32 -1.442695, %v410_v8 }
 0x32b   : > { %586 = vpow2.f32 %v543_v9 }
 0x32d   : > { %v581_v10 = vpop.eup %580 }
 0x32e   : > { %v423_v11 = vadd.f32 1.0, %v581_v10 }
 0x330   : > { %588 = vrcp.f32 %v423_v11 }
 0x331   : > { %v583_v1 = vpop.eup %582 }
 0x332   : > { %v585_v12 = vpop.eup %584  ;;  %v425_v13 = vadd.f32 1.0, %v583_v1 }
 0x333   : > { %v424_v14 = vadd.f32 1.0, %v585_v12 }
 0x334   : > { %590 = vrcp.f32 %v425_v13 }
 0x335   : > { %v587_v3 = vpop.eup %586  ;;  %592 = vrcp.f32 %v424_v14 }
 0x336   : > { %v426_v4 = vadd.f32 1.0, %v587_v3 }
 0x338   : > { %594 = vrcp.f32 %v426_v4 }
 0x33a   : > { %v589_v15 = vpop.eup %588 }
 0x33b   : > { %437 = vperm.xlu1 %578, %v589_v15  }
 0x33e   : > { %v591_v16 = vpop.eup %590 }
 0x33f   : > { %v593_v5 = vpop.eup %592  ;;  %447 = vperm.xlu1 %578, %v591_v16  }
 0x340   : > { %442 = vperm.xlu0 %579, %v593_v5  }
 0x342   : > { %v595_v17 = vpop.eup %594 }
 0x343   : > { %452 = vperm.xlu1 %578, %v595_v17  }
 0x3ba   : > { %v438_v18 = vpop.permute.xlu1 %437 }
 0x3bb   : > { %v455_v19 = vmul.f32 %v438_v18, %v318_v34  ;;  %v456_v20 = vmul.f32 %v438_v18, %v319_v37 }
 0x3bd   : > { %463 = vst [vmem:[%s170_s15] sm:$0xff] %v455_v19  ;;  %464 = vst [vmem:[%s170_s15 + $0x8] sm:$0xff] %v456_v20 }
 0x3be   : > { %v448_v21 = vpop.permute.xlu1 %447 }
 0x3bf   : > { %v443_v22 = vpop.permute.xlu0 %442  ;;  %v459_v23 = vmul.f32 %v448_v21, %v322_v38  ;;  %v460_v24 = vmul.f32 %v448_v21, %v323_v39 }
 0x3c0   : > { %v457_v25 = vmul.f32 %v443_v22, %v320_v49  ;;  %v458_v28 = vmul.f32 %v443_v22, %v321_v50 }
 0x3c1   : > { %467 = vst [vmem:[%s170_s15 + $0x20] sm:$0xff] %v459_v23  ;;  %468 = vst [vmem:[%s170_s15 + $0x28] sm:$0xff] %v460_v24 }
 0x3c2   : > { %465 = vst [vmem:[%s170_s15 + $0x10] sm:$0xff] %v457_v25  ;;  %466 = vst [vmem:[%s170_s15 + $0x18] sm:$0xff] %v458_v28  ;;  %v453_v32 = vpop.permute.xlu1 %452 }
 0x3c3   : > { %v461_v34 = vmul.f32 %v453_v32, %v324_v52  ;;  %v462_v30 = vmul.f32 %v453_v32, %v325_v53 }
 0x3c5   : > { %469 = vst [vmem:[%s170_s15 + $0x30] sm:$0xff] %v461_v34  ;;  %470 = vst [vmem:[%s170_s15 + $0x38] sm:$0xff] %v462_v30 }
 0x3c6 PF: > { %s13_s12 = sadd.s32 1, %s602_s12  }
 0x3c7   : > { %p10_p4 = scmp.ge.s32.totalorder %s13_s12, 4  }
 0x3c9   :  { %12 = sbr.rel (!%p10_p4) target bundleno = 1 (0x1), region = 62 }

</bundles_post_ra>
